<compile_context>
chip_gen: v6e
topology: v6e:2x2x1
jax: 0.10.0
libtpu: 0.0.40
codegen_flags: <defaults>
</compile_context>

<pallas_src>
import jax
import jax.numpy as jnp
from jax import lax
from jax.experimental import pallas as pl
from jax.experimental.pallas import tpu as pltpu


def _round_up(a: int, b: int) -> int:
    return (a + b - 1) // b * b


def _pad2(a, rows, cols):
    r, c = a.shape
    if r == rows and c == cols:
        return a
    return jnp.pad(a, ((0, rows - r), (0, cols - c)))


def _vmem_limit_bytes() -> int:
    # v5e/v6e: 128 MiB physical -> 64 MiB limit. v7x: 64 MiB physical -> 48 MiB.
    cap = 128 * 1024 * 1024
    try:
        cap = int(pltpu.get_tpu_info().vmem_capacity_bytes)
    except Exception:
        pass
    return min(cap * 3 // 4, 64 * 1024 * 1024)


def _default_tiles() -> tuple:
    kind = ""
    try:
        kind = jax.devices()[0].device_kind.lower()
    except Exception:
        pass
    if "v6" in kind:
        # v6e: 918 TF/s vs ~1.4 TB/s HBM -> needs big output tiles; 128 MiB VMEM.
        return 1024, 2048, 512
    # v5e / v7x (and default): intensity 512*1024/1536 ~ 341 flop/byte,
    # fits comfortably under a 48 MiB VMEM limit with double-buffering.
    return 512, 1024, 512


# ---------------------------------------------------------------------------
# Pre-pass kernel:  t = x @ down^T      ([M, R], accumulated over K)
# ---------------------------------------------------------------------------
def _lora_down_kernel(x_ref, down_ref, t_ref, acc_ref):
    k = pl.program_id(1)

    @pl.when(k == 0)
    def _init():
        acc_ref[...] = jnp.zeros_like(acc_ref)

    acc_ref[...] += lax.dot_general(
        x_ref[...], down_ref[...],
        dimension_numbers=(((1,), (1,)), ((), ())),
        preferred_element_type=jnp.float32)

    @pl.when(k == pl.num_programs(1) - 1)
    def _finalize():
        t_ref[...] = acc_ref[...].astype(t_ref.dtype)


# ---------------------------------------------------------------------------
# Main kernel:  y = x @ W^T  (+ t @ up^T + bias at k == last)
# ---------------------------------------------------------------------------
def _lora_linear_kernel(x_ref, w_ref, t_ref, up_ref, b_ref, o_ref, acc_ref):
    k = pl.program_id(2)

    @pl.when(k == 0)
    def _init():
        acc_ref[...] = jnp.zeros_like(acc_ref)

    # Main GEMM tile: contract over K (in_features) of both operands — drives
    # the MXU directly with the torch-layout weight, no in-kernel transpose.
    acc_ref[...] += lax.dot_general(
        x_ref[...], w_ref[...],
        dimension_numbers=(((1,), (1,)), ((), ())),
        preferred_element_type=jnp.float32)

    @pl.when(k == pl.num_programs(2) - 1)
    def _finalize():
        # t and up share the compute dtype -> same-dtype MXU dot, f32 accumulate.
        y = acc_ref[...] + lax.dot_general(
            t_ref[...], up_ref[...],
            dimension_numbers=(((1,), (1,)), ((), ())),
            preferred_element_type=jnp.float32)
        y = y + b_ref[...]                      # bias is f32
        o_ref[...] = y.astype(o_ref.dtype)


def linear_with_lora(x, weight, up, down, bias=None, *, tm=None, tn=None, tk=None):
    """x: [..., in_f]; weight: [out_f, in_f]; up: [out_f, r]; down: [r, in_f];
    bias: [out_f] or None. Returns [..., out_f]."""
    out_f, in_f = weight.shape
    r = up.shape[1]
    lead = x.shape[:-1]
    x2 = x.reshape(-1, in_f)
    M = x2.shape[0]

    dtype = x.dtype
    weight = weight.astype(dtype)     # matches torch: original_weight.to(x)
    up = up.astype(dtype)
    down = down.astype(dtype)
    if bias is None:
        bias_f32 = jnp.zeros((out_f,), jnp.float32)
    else:
        bias_f32 = bias.astype(jnp.float32)   # keep full precision for the add

    d_tm, d_tn, d_tk = _default_tiles()
    tm = d_tm if tm is None else tm
    tn = d_tn if tn is None else tn
    tk = d_tk if tk is None else tk

    # Padded / tiled sizes: sublane dims to multiples of 8, lane dims to 128.
    # Tiles shrink to the (padded) full dim for small problems, so every block
    # shape is either an (8,128)-multiple or equal to the full array dim.
    M_p = _round_up(M, 8)
    tm = min(tm, M_p)
    M_p = _round_up(M_p, tm)

    N_p = _round_up(out_f, 128)
    tn = min(tn, N_p)
    N_p = _round_up(N_p, tn)

    K_p = _round_up(in_f, 128)
    tk = min(tk, K_p)
    K_p = _round_up(K_p, tk)

    R_p = _round_up(r, 128)   # keep the LoRA rank lane-dense

    # TODO(synk): weight/up/down padding could be hoisted to parameter-prep time
    # (done once per layer) instead of per forward call.
    x_p = _pad2(x2, M_p, K_p)
    w_p = _pad2(weight, N_p, K_p)
    up_p = _pad2(up, N_p, R_p)
    down_p = _pad2(down, R_p, K_p)
    b_p = _pad2(bias_f32.reshape(1, out_f), 1, N_p)

    vmem_limit = _vmem_limit_bytes()
    itemsize = jnp.dtype(dtype).itemsize

    # ---- Pre-pass: t = x @ down^T, tiny [M_p, R_p] intermediate ------------
    t = pl.pallas_call(
        _lora_down_kernel,
        out_shape=jax.ShapeDtypeStruct((M_p, R_p), dtype),
        grid=(M_p // tm, K_p // tk),
        in_specs=[
            pl.BlockSpec((tm, tk), lambda i, k: (i, k)),      # x
            pl.BlockSpec((R_p, tk), lambda i, k: (0, k)),     # down (torch layout)
        ],
        out_specs=pl.BlockSpec((tm, R_p), lambda i, k: (i, 0)),
        scratch_shapes=[pltpu.VMEM((tm, R_p), jnp.float32)],
        compiler_params=pltpu.CompilerParams(
            dimension_semantics=("parallel", "arbitrary"),
            vmem_limit_bytes=vmem_limit,
        ),
        cost_estimate=pl.CostEstimate(
            flops=2 * M_p * R_p * K_p,
            transcendentals=0,
            bytes_accessed=(x_p.size + down_p.size) * itemsize
                           + M_p * R_p * itemsize,
        ),
    )(x_p, down_p)

    # ---- Main GEMM + LoRA finalize ------------------------------------------
    grid = (M_p // tm, N_p // tn, K_p // tk)

    cost = pl.CostEstimate(
        flops=2 * M_p * N_p * K_p + 2 * M_p * N_p * R_p,
        transcendentals=0,
        bytes_accessed=((M_p // tm) * N_p * K_p            # weight re-streams
                        + (N_p // tn) * M_p * K_p          # x re-streams
                        + M_p * R_p + N_p * R_p
                        + M_p * N_p) * itemsize
                       + N_p * 4,
    )

    out = pl.pallas_call(
        _lora_linear_kernel,
        out_shape=jax.ShapeDtypeStruct((M_p, N_p), dtype),
        grid=grid,
        in_specs=[
            pl.BlockSpec((tm, tk), lambda i, j, k: (i, k)),      # x
            pl.BlockSpec((tn, tk), lambda i, j, k: (j, k)),      # weight (torch layout)
            pl.BlockSpec((tm, R_p), lambda i, j, k: (i, 0)),     # t = x @ down^T
            pl.BlockSpec((tn, R_p), lambda i, j, k: (j, 0)),     # up
            pl.BlockSpec((1, tn), lambda i, j, k: (0, j)),       # bias (f32, added at k==last)
        ],
        out_specs=pl.BlockSpec((tm, tn), lambda i, j, k: (i, j)),
        scratch_shapes=[
            pltpu.VMEM((tm, tn), jnp.float32),    # f32 accumulator
        ],
        compiler_params=pltpu.CompilerParams(
            dimension_semantics=("parallel", "parallel", "arbitrary"),
            vmem_limit_bytes=vmem_limit,
        ),
        cost_estimate=cost,
    )(x_p, w_p, t, up_p, b_p)

    return out[:M, :out_f].reshape(*lead, out_f)


if __name__ == "__main__":
    # Small shapes consistent with a linear layer: batch=2, seq=8, hidden=32.
    batch, seq = 2, 8
    in_features, out_features, rank = 32, 32, 4

    key = jax.random.PRNGKey(0)
    kx, kw, ku, kd, kb = jax.random.split(key, 5)

    x = jax.random.normal(kx, (batch, seq, in_features), dtype=jnp.float32)
    weight = jax.random.normal(kw, (out_features, in_features), dtype=jnp.float32) * 0.1
    up = jax.random.normal(ku, (out_features, rank), dtype=jnp.float32) * 0.1
    down = jax.random.normal(kd, (rank, in_features), dtype=jnp.float32) * 0.1
    bias = jax.random.normal(kb, (out_features,), dtype=jnp.float32) * 0.1

    y = linear_with_lora(x, weight, up, down, bias)
    y = jax.block_until_ready(y)

    # Pure-JAX reference (same math as the torch forward, bound-LoRA path).
    w_eff = weight + up @ down
    y_ref = x @ w_eff.T + bias

    assert y.shape == (batch, seq, out_features)
    assert jnp.allclose(y, y_ref, atol=1e-5, rtol=1e-5)
    print("KERNEL_OK")
</pallas_src>

<mosaic_0001>
module attributes {stable_mosaic.version = 11 : i64} {
  func.func @_lora_down_kernel(%arg0: i32, %arg1: i32, %arg2: memref<16x128xf32, #tpu.memory_space<vmem>>, %arg3: memref<128x128xf32, #tpu.memory_space<vmem>>, %arg4: memref<16x128xf32, #tpu.memory_space<vmem>>, %arg5: memref<16x128xf32, #tpu.memory_space<vmem>>) attributes {dimension_semantics = [#tpu.dimension_semantics<parallel>, #tpu.dimension_semantics<arbitrary>], iteration_bounds = array<i64: 1, 1>, scalar_prefetch = 0 : i64, scratch_operands = 1 : i64, tpu.core_type = #tpu.core_type<tc>, window_params = [{transform_indices = @transform_0, window_bounds = array<i64: 16, 128>}, {transform_indices = @transform_1, window_bounds = array<i64: 128, 128>}, {transform_indices = @transform_2, window_bounds = array<i64: 16, 128>}]} {
    %c0_i32 = arith.constant 0 : i32
    %0 = arith.cmpi eq, %arg1, %c0_i32 : i32
    %1 = arith.extui %0 : i1 to i32
    %c0_i32_0 = arith.constant 0 : i32
    %2 = arith.cmpi ne, %1, %c0_i32_0 : i32
    scf.if %2 {
      %cst_10 = arith.constant 0.000000e+00 : f32
      %12 = vector.broadcast %cst_10 : f32 to vector<16x128xf32>
      %c0_11 = arith.constant 0 : index
      %c0_12 = arith.constant 0 : index
      %13 = vector.load %arg5[%c0_11, %c0_12] : memref<16x128xf32, #tpu.memory_space<vmem>>, vector<16x128xf32>
      tpu.vector_store %arg5[%c0_11, %c0_12], %12 {strides = array<i32>} : memref<16x128xf32, #tpu.memory_space<vmem>>, vector<16x128xf32>,
    } else {
    }
    %c0 = arith.constant 0 : index
    %c0_1 = arith.constant 0 : index
    %3 = vector.load %arg5[%c0, %c0_1] : memref<16x128xf32, #tpu.memory_space<vmem>>, vector<16x128xf32>
    %c0_2 = arith.constant 0 : index
    %c0_3 = arith.constant 0 : index
    %4 = vector.load %arg2[%c0_2, %c0_3] : memref<16x128xf32, #tpu.memory_space<vmem>>, vector<16x128xf32>
    %c0_4 = arith.constant 0 : index
    %c0_5 = arith.constant 0 : index
    %5 = vector.load %arg3[%c0_4, %c0_5] : memref<128x128xf32, #tpu.memory_space<vmem>>, vector<128x128xf32>
    %cst = arith.constant dense<0.000000e+00> : vector<16x128xf32>
    %6 = tpu.matmul %4, %5, %cst {dimension_numbers = #tpu.dot_dimension_numbers<[1], [1], [0], [0], [0, 0, 1, 0], [], []>} : vector<16x128xf32>, vector<128x128xf32>, vector<16x128xf32> -> vector<16x128xf32>
    %7 = arith.addf %3, %6 : vector<16x128xf32>
    %c0_6 = arith.constant 0 : index
    %c0_7 = arith.constant 0 : index
    %8 = vector.load %arg5[%c0_6, %c0_7] : memref<16x128xf32, #tpu.memory_space<vmem>>, vector<16x128xf32>
    tpu.vector_store %arg5[%c0_6, %c0_7], %7 {strides = array<i32>} : memref<16x128xf32, #tpu.memory_space<vmem>>, vector<16x128xf32>,
    %c0_i32_8 = arith.constant 0 : i32
    %9 = arith.cmpi eq, %arg1, %c0_i32_8 : i32
    %10 = arith.extui %9 : i1 to i32
    %c0_i32_9 = arith.constant 0 : i32
    %11 = arith.cmpi ne, %10, %c0_i32_9 : i32
    scf.if %11 {
      %c0_10 = arith.constant 0 : index
      %c0_11 = arith.constant 0 : index
      %12 = vector.load %arg5[%c0_10, %c0_11] : memref<16x128xf32, #tpu.memory_space<vmem>>, vector<16x128xf32>
      %c0_12 = arith.constant 0 : index
      %c0_13 = arith.constant 0 : index
      %13 = vector.load %arg4[%c0_12, %c0_13] : memref<16x128xf32, #tpu.memory_space<vmem>>, vector<16x128xf32>
      tpu.vector_store %arg4[%c0_12, %c0_13], %12 {strides = array<i32>} : memref<16x128xf32, #tpu.memory_space<vmem>>, vector<16x128xf32>,
    } else {
    }
    return
  }
  func.func @transform_0(%arg0: i32, %arg1: i32) -> (i32, i32) {
    %c0_i32 = arith.constant 0 : i32
    return %arg0, %arg1 : i32, i32
  }
  func.func @transform_1(%arg0: i32, %arg1: i32) -> (i32, i32) {
    %c0_i32 = arith.constant 0 : i32
    %c0_i32_0 = arith.constant 0 : i32
    return %c0_i32, %arg1 : i32, i32
  }
  func.func @transform_2(%arg0: i32, %arg1: i32) -> (i32, i32) {
    %c0_i32 = arith.constant 0 : i32
    %c0_i32_0 = arith.constant 0 : i32
    return %arg0, %c0_i32 : i32, i32
  }
}

</mosaic_0001>

<bundles_post_ra>
// kernel: tpu_custom_call.1
= control target key start
LH: loop header
LB: loop body
LE: loop exit
PB: predicated region body
PF: predicated region fallthrough
CT: control target
= control target key end

     0   :  { %7 = vsyncpa [#allocation4], 0  ;;  %s332_s0 = inlined_call_operand.hbm [shape: f32[16,128], index: 0, kind: input, shape index: {}]   ;;  %s333_s1 = inlined_call_operand.hbm [shape: f32[128,128], index: 1, kind: input, shape index: {}]   ;;  %s334_s2 = inlined_call_operand.hbm [shape: f32[16,128], index: 2, kind: output, shape index: {}]  }
   0x1   :  { %8 = vsyncpa [#allocation7], 0 }
   0x2   :  { %9 = vsyncpa [#allocation5], 0  ;;  %s294_s9 = smov [#allocation3]  }
   0x3   :  { %s15_s10 = sshll.u32 %s294_s9, 4  ;;  %s16_s10 = int_to_ptr.vmem [resolvable:$true] %s15_s10 }
   0x4   :  { %s236_s11 = scalar_lea.vmem %s16_s10, 256  ;;  %p241_p1 = scmp.lt.s32.totalorder %s16_s10, %s16_s10 }
   0x5   :  { %p237_p0 = scmp.ne.s32.totalorder %s16_s10, %s236_s11  ;;  %p242_p2 = scmp.lt.s32.totalorder %s236_s11, %s236_s11 }
   0x7   :  { %p243_p3 = por %p242_p2, %p241_p1 }
   0x9   :  { %p244_p4 = pnand %p243_p3, %p237_p0 }
   0xb   :  { %247 = shalt.err (!%p244_p4)
}
   0xc   :  { %s295_s12 = smov 128   ;;  %s296_s13 = smov 8  }
   0xd   :  { %21 = dma.hbm_to_vmem [thread:$0]  %s332_s0, 256, %s16_s10, [#allocation4], %s295_s12, %s295_s12, %s296_s13  }
   0xe   :  { %s297_s16 = smov [#allocation6]  }
   0xf   :  { %s27_s17 = sshll.u32 %s297_s16, 4  ;;  %s28_s17 = int_to_ptr.vmem [resolvable:$true] %s27_s17 }
  0x10   :  { %s256_s18 = scalar_lea.vmem %s28_s17, 2048  ;;  %p261_p6 = scmp.lt.s32.totalorder %s28_s17, %s28_s17 }
  0x11   :  { %p257_p5 = scmp.ne.s32.totalorder %s28_s17, %s256_s18  ;;  %p262_p7 = scmp.lt.s32.totalorder %s256_s18, %s256_s18 }
  0x13   :  { %p263_p8 = por %p262_p7, %p261_p6 }
  0x15   :  { %p264_p9 = pnand %p263_p8, %p257_p5 }
  0x17   :  { %267 = shalt.err (!%p264_p9)
}
  0x18   :  { %33 = dma.hbm_to_vmem [thread:$0]  %s333_s1, 2048, %s28_s17, [#allocation7], %s295_s12, %s295_s12, %s296_s13  }
  0x19   :  { %288 = dma.done.wait [#allocation4], 256  }
  0x1a   :  { %289 = vsyncadd [#allocation4], 4294967040 }
  0x1b   :  { %290 = dma.done.wait [#allocation7], 2048  }
  0x1c   :  { %291 = vsyncadd [#allocation7], 4294965248  ;;  %v65_v0 = vld [vmem:[#allocation6 + $0x78] sm:$0xff]  ;;  %v64_v1 = vld [vmem:[#allocation6 + $0x70] sm:$0xff]  ;;  %s298_s0 = smov [#allocation8]  }
  0x1d   :  { %188 = vmatprep.subr.mxu0 %v65_v0  ;;  %v63_v2 = vld [vmem:[#allocation6 + $0x68] sm:$0xff]  ;;  %v48_v3 = vld [vmem:[#allocation3] sm:$0xff]  ;;  %v62_v4 = vld [vmem:[#allocation6 + $0x60] sm:$0xff]  ;;  %s157_s1 = sshll.u32 %s298_s0, 4  ;;  %s158_s1 = int_to_ptr.vmem [resolvable:$true] %s157_s1 }
  0x1e   :  { %189 = vmatpush3.xpose.msra.mxu0 %v65_v0  ;;  %220 = vmatprep.mubr.f32.mxu0 %v48_v3  ;;  %v61_v5 = vld [vmem:[#allocation6 + $0x58] sm:$0xff]  ;;  %v60_v6 = vld [vmem:[#allocation6 + $0x50] sm:$0xff]  ;;  %v59_v7 = vld [vmem:[#allocation6 + $0x48] sm:$0xff]  ;;  %s268_s21 = scalar_lea.vmem %s158_s1, 256  ;;  %p273_p11 = scmp.lt.s32.totalorder %s158_s1, %s158_s1 }
  0x1f   :  { %190 = vmatprep.subr.mxu0 %v64_v1  ;;  %v58_v8 = vld [vmem:[#allocation6 + $0x40] sm:$0xff]  ;;  %v57_v9 = vld [vmem:[#allocation6 + $0x38] sm:$0xff]  ;;  %v56_v10 = vld [vmem:[#allocation6 + $0x30] sm:$0xff]  ;;  %p269_p10 = scmp.ne.s32.totalorder %s158_s1, %s268_s21  ;;  %p274_p12 = scmp.lt.s32.totalorder %s268_s21, %s268_s21 }
  0x20   :  { %v55_v11 = vld [vmem:[#allocation6 + $0x28] sm:$0xff]  ;;  %v54_v12 = vld [vmem:[#allocation6 + $0x20] sm:$0xff]  ;;  %v53_v13 = vld [vmem:[#allocation6 + $0x18] sm:$0xff] }
  0x21   :  { %v52_v14 = vld [vmem:[#allocation6 + $0x10] sm:$0xff]  ;;  %v51_v15 = vld [vmem:[#allocation6 + $0x8] sm:$0xff]  ;;  %v50_v16 = vld [vmem:[#allocation6] sm:$0xff]  ;;  %p275_p13 = por %p274_p12, %p273_p11 }
  0x22   :  { %191 = vmatpush3.xpose.msra.mxu0 %v64_v1  ;;  %v49_v17 = vld [vmem:[#allocation3 + $0x8] sm:$0xff] }
  0x23   :  { %192 = vmatprep.subr.mxu0 %v63_v2  ;;  %p276_p0 = pnand %p275_p13, %p269_p10 }
  0x26   :  { %193 = vmatpush3.xpose.msra.mxu0 %v63_v2 }
  0x27   :  { %194 = vmatprep.subr.mxu0 %v62_v4 }
  0x2a   :  { %195 = vmatpush3.xpose.msra.mxu0 %v62_v4 }
  0x2b   :  { %196 = vmatprep.subr.mxu0 %v61_v5 }
  0x2e   :  { %197 = vmatpush3.xpose.msra.mxu0 %v61_v5 }
  0x2f   :  { %198 = vmatprep.subr.mxu0 %v60_v6 }
  0x32   :  { %199 = vmatpush3.xpose.msra.mxu0 %v60_v6 }
  0x33   :  { %200 = vmatprep.subr.mxu0 %v59_v7 }
  0x36   :  { %201 = vmatpush3.xpose.msra.mxu0 %v59_v7 }
  0x37   :  { %202 = vmatprep.subr.mxu0 %v58_v8 }
  0x3a   :  { %203 = vmatpush3.xpose.msra.mxu0 %v58_v8 }
  0x3b   :  { %204 = vmatprep.subr.mxu0 %v57_v9 }
  0x3e   :  { %205 = vmatpush3.xpose.msra.mxu0 %v57_v9 }
  0x3f   :  { %206 = vmatprep.subr.mxu0 %v56_v10 }
  0x42   :  { %207 = vmatpush3.xpose.msra.mxu0 %v56_v10 }
  0x43   :  { %208 = vmatprep.subr.mxu0 %v55_v11 }
  0x46   :  { %209 = vmatpush3.xpose.msra.mxu0 %v55_v11 }
  0x47   :  { %210 = vmatprep.subr.mxu0 %v54_v12 }
  0x4a   :  { %211 = vmatpush3.xpose.msra.mxu0 %v54_v12 }
  0x4b   :  { %212 = vmatprep.subr.mxu0 %v53_v13 }
  0x4e   :  { %213 = vmatpush3.xpose.msra.mxu0 %v53_v13 }
  0x4f   :  { %214 = vmatprep.subr.mxu0 %v52_v14 }
  0x52   :  { %215 = vmatpush3.xpose.msra.mxu0 %v52_v14 }
  0x53   :  { %216 = vmatprep.subr.mxu0 %v51_v15 }
  0x56   :  { %217 = vmatpush3.xpose.msra.mxu0 %v51_v15 }
  0x57   :  { %218 = vmatprep.subr.mxu0 %v50_v16 }
  0x5a   :  { %219 = vmatpush3.xpose.msra.mxu0 %v50_v16 }
  0x5d   :  { %221 = vmatmul.mubr.f32.vlgmr.msra.gmra.mxu0 %v49_v17 }
 0x11d   :  { %v222_v18 = vpop.f32.mrf.mxu0 }
 0x11e   :  { %151 = vst [vmem:[#allocation8 + $0x8] sm:$0xff] %v222_v18 }
 0x11f   :  { %v132_v19 = vpop.f32.mrf.mxu0 }
 0x120   :  { %150 = vst [vmem:[#allocation8] sm:$0xff] %v132_v19 }
 0x121   :  { %279 = shalt.err (!%p276_p0)
}
 0x122   :  { %163 = dma.vmem_to_hbm [thread:$0]  %s158_s1, 256, %s334_s2, [#allocation5], %s295_s12, %s295_s12, %s296_s13  }
 0x123   :  { %292 = dma.done.wait [#allocation5], 256  }
 0x124   :  { %293 = vsyncadd [#allocation5], 4294967040 }
 0x125   :  { %167 = vsyncpa [#allocation4], 1 }
 0x126   :  { %168 = vsyncpa [#allocation7], 1 }
 0x127   :  { %169 = vsyncpa [#allocation5], 1 }

</bundles_post_ra>
